<compile_context>
chip_gen: v7x
topology: tpu7x:2x2x1
jax: 0.10.0
libtpu: 0.0.40
codegen_flags: <defaults>
</compile_context>

<pallas_src>
import functools

import jax
import jax.numpy as jnp
from jax.experimental import pallas as pl
from jax.experimental.pallas import tpu as pltpu


def _round_up(x, m):
    return (x + m - 1) // m * m


# ---------------------------------------------------------------------------
# Single fused kernel: two small MXU dots + bias, then argmax / relu epilogue.
# Head columns: [0, num_outputs) = headPlanner, column num_outputs = headTime.
# ---------------------------------------------------------------------------
def _actor_kernel(x_pix_ref, x_add_ref, w_pix_ref, w_add_ref, b_ref, out_ref,
                  *, num_outputs):
    logits = (
        jnp.dot(x_pix_ref[...], w_pix_ref[...], preferred_element_type=jnp.float32)
        + jnp.dot(x_add_ref[...], w_add_ref[...], preferred_element_type=jnp.float32)
        + b_ref[...]
    )  # (B, 128) f32
    bsz, ncols = logits.shape
    col = jax.lax.broadcasted_iota(jnp.int32, (bsz, ncols), 1)

    # headPlanner: sigmoid dropped (monotonic => argmax-invariant); first-index
    # argmax matches torch .max(1)[1] tie-breaking.
    planner = jnp.where(col < num_outputs, logits, -jnp.inf)
    max_v = jnp.max(planner, axis=1, keepdims=True)
    arg = jnp.min(
        jnp.where(planner == max_v, col, ncols), axis=1, keepdims=True
    ).astype(jnp.float32)

    # headTime: single static column -> lane slice, then relu.
    time_out = jnp.maximum(logits[:, num_outputs : num_outputs + 1], 0.0)

    # Lane-dense (B, 128) store: col 0 = argmax index, col 1 = relu(time).
    out_ref[...] = jnp.where(col == 0, arg, jnp.where(col == 1, time_out, 0.0))


# ---------------------------------------------------------------------------
# Parameter init (deterministic, synthetic) — PyTorch-layout parameters.
# ---------------------------------------------------------------------------
def init_actor_params(key, h, w, outputs):
    n_chan = 128
    n_add = 35
    din = (h - 1) * (w - 1) * n_chan + n_add
    ks = jax.random.split(key, 6)
    return dict(
        conv_w=jax.random.normal(ks[0], (n_chan, 1, 2, 2), jnp.float32) * 0.1,
        conv_b=jax.random.normal(ks[1], (n_chan,), jnp.float32) * 0.1,
        wp=jax.random.normal(ks[2], (outputs, din), jnp.float32) * 0.02,
        bp=jax.random.normal(ks[3], (outputs,), jnp.float32) * 0.02,
        wt=jax.random.normal(ks[4], (1, din), jnp.float32) * 0.02,
        bt=jax.random.normal(ks[5], (1,), jnp.float32) * 0.02,
    )


# ---------------------------------------------------------------------------
# One-time weight prep (off the hot path): fold conv into the heads and pack
# into two lane-padded f32 slabs + one f32 bias row.
# ---------------------------------------------------------------------------
def prepare_actor_weights(params, h, w, outputs):
    n_chan = params["conv_w"].shape[0]  # 128
    P = (h - 1) * (w - 1)
    n_add = params["wp"].shape[1] - n_chan * P
    n_heads = outputs + 1

    # Stack both heads: rows 0..outputs-1 = planner, row `outputs` = time.
    w_heads = jnp.concatenate([params["wp"], params["wt"]], axis=0)  # (nh, din)
    b_heads = jnp.concatenate([params["bp"], params["bt"]], axis=0)  # (nh,)

    # Split head weights into conv-feature part (PyTorch NCHW flatten order:
    # feature = c*P + i*(W-1) + j) and additional-feature part.
    w_conv_part = w_heads[:, : n_chan * P].reshape(n_heads, n_chan, h - 1, w - 1)
    w_add_part = w_heads[:, n_chan * P :]  # (nh, n_add)

    # Fold the conv bias into the head biases.
    b_eff = b_heads + jnp.einsum("ocij,c->o", w_conv_part, params["conv_b"])

    # Fold the conv weights: project head weights from conv-feature space down
    # to raw-pixel space (transposed-conv style scatter over the 2x2 taps).
    w_pix = jnp.zeros((n_heads, h, w), jnp.float32)
    for kh in range(2):
        for kw in range(2):
            contrib = jnp.einsum(
                "ocij,c->oij", w_conv_part, params["conv_w"][:, 0, kh, kw]
            )
            w_pix = w_pix.at[:, kh : kh + h - 1, kw : kw + w - 1].add(contrib)

    # Pack per-slab: columns = [planner heads | time head | zero pad to 128].
    ncols = _round_up(n_heads, 128)
    w_pix_packed = (
        jnp.zeros((h * w, ncols), jnp.float32)
        .at[:, :n_heads].set(w_pix.reshape(n_heads, h * w).T)
    )
    w_add_packed = (
        jnp.zeros((n_add, ncols), jnp.float32).at[:, :n_heads].set(w_add_part.T)
    )
    b_packed = jnp.zeros((1, ncols), jnp.float32).at[0, :n_heads].set(b_eff)
    return w_pix_packed, w_add_packed, b_packed


# ---------------------------------------------------------------------------
# Hot-path forward: free reshape + ONE pallas_call (no concat/pad/cast glue).
# ---------------------------------------------------------------------------
@functools.partial(jax.jit, static_argnames=("outputs",))
def actor_forward(w_pix, w_add, b, f_state, f_state_additional, *, outputs):
    B = f_state.shape[0]
    h, w = f_state.shape[2], f_state.shape[3]
    x_pix = f_state.reshape(B, h * w)  # layout-only reshape, fused by XLA

    ncols = w_pix.shape[1]
    vmem = pl.BlockSpec(memory_space=pltpu.MemorySpace.VMEM)
    out = pl.pallas_call(
        functools.partial(_actor_kernel, num_outputs=outputs),
        out_shape=jax.ShapeDtypeStruct((B, ncols), jnp.float32),
        in_specs=[vmem] * 5,
        out_specs=vmem,
    )(x_pix, f_state_additional, w_pix, w_add, b)
    return out[:, :2]  # (B, 2): [argmax index (as f32), relu(time)]


if __name__ == "__main__":
    key = jax.random.PRNGKey(0)
    h, w, outputs, batch = 5, 5, 6, 2
    k_params, k_state, k_add = jax.random.split(key, 3)

    params = init_actor_params(k_params, h, w, outputs)
    w_pix, w_add, b = prepare_actor_weights(params, h, w, outputs)  # one-time

    f_state = jax.random.normal(k_state, (batch, 1, h, w), jnp.float32)
    f_state_additional = jax.random.normal(k_add, (batch, 35), jnp.float32)

    out = actor_forward(w_pix, w_add, b, f_state, f_state_additional,
                        outputs=outputs)
    out = jax.block_until_ready(out)
    assert out.shape == (batch, 2) and out.dtype == jnp.float32
    print("KERNEL_OK")
</pallas_src>

<mosaic_0001>
module attributes {stable_mosaic.version = 11 : i64} {
  func.func @_actor_kernel(%arg0: memref<2x25xf32, #tpu.memory_space<vmem>>, %arg1: memref<2x35xf32, #tpu.memory_space<vmem>>, %arg2: memref<25x128xf32, #tpu.memory_space<vmem>>, %arg3: memref<35x128xf32, #tpu.memory_space<vmem>>, %arg4: memref<1x128xf32, #tpu.memory_space<vmem>>, %arg5: memref<2x128xf32, #tpu.memory_space<vmem>>) attributes {dimension_semantics = [], scalar_prefetch = 0 : i64, scratch_operands = 0 : i64, tpu.core_type = #tpu.core_type<tc>} {
    %c0 = arith.constant 0 : index
    %c0_0 = arith.constant 0 : index
    %0 = vector.load %arg0[%c0, %c0_0] : memref<2x25xf32, #tpu.memory_space<vmem>>, vector<2x25xf32>
    %c0_1 = arith.constant 0 : index
    %c0_2 = arith.constant 0 : index
    %1 = vector.load %arg2[%c0_1, %c0_2] : memref<25x128xf32, #tpu.memory_space<vmem>>, vector<25x128xf32>
    %cst = arith.constant dense<0.000000e+00> : vector<2x128xf32>
    %2 = tpu.matmul %0, %1, %cst {dimension_numbers = #tpu.dot_dimension_numbers<[1], [0], [0], [1], [0, 0, 1, 1], [], []>} : vector<2x25xf32>, vector<25x128xf32>, vector<2x128xf32> -> vector<2x128xf32>
    %c0_3 = arith.constant 0 : index
    %c0_4 = arith.constant 0 : index
    %3 = vector.load %arg1[%c0_3, %c0_4] : memref<2x35xf32, #tpu.memory_space<vmem>>, vector<2x35xf32>
    %c0_5 = arith.constant 0 : index
    %c0_6 = arith.constant 0 : index
    %4 = vector.load %arg3[%c0_5, %c0_6] : memref<35x128xf32, #tpu.memory_space<vmem>>, vector<35x128xf32>
    %cst_7 = arith.constant dense<0.000000e+00> : vector<2x128xf32>
    %5 = tpu.matmul %3, %4, %cst_7 {dimension_numbers = #tpu.dot_dimension_numbers<[1], [0], [0], [1], [0, 0, 1, 1], [], []>} : vector<2x35xf32>, vector<35x128xf32>, vector<2x128xf32> -> vector<2x128xf32>
    %6 = arith.addf %2, %5 : vector<2x128xf32>
    %c0_8 = arith.constant 0 : index
    %c0_9 = arith.constant 0 : index
    %7 = vector.load %arg4[%c0_8, %c0_9] : memref<1x128xf32, #tpu.memory_space<vmem>>, vector<1x128xf32>
    %8 = vector.broadcast %7 : vector<1x128xf32> to vector<2x128xf32>
    %9 = arith.addf %6, %8 : vector<2x128xf32>
    %10 = tpu.iota {dimensions = array<i32: 1>} : vector<2x128xi32>
    %c6_i32 = arith.constant 6 : i32
    %11 = vector.broadcast %c6_i32 : i32 to vector<2x128xi32>
    %12 = arith.cmpi slt, %10, %11 : vector<2x128xi32>
    %cst_10 = arith.constant 0xFF800000 : f32
    %13 = vector.broadcast %cst_10 : f32 to vector<2x128xf32>
    %14 = arith.select %12, %9, %13 : vector<2x128xi1>, vector<2x128xf32>
    %cst_11 = arith.constant dense<0xFF800000> : vector<2xf32>
    %15 = vector.multi_reduction <maximumf>, %14, %cst_11 [1] : vector<2x128xf32> to vector<2xf32>
    %16 = vector.shape_cast %15 : vector<2xf32> to vector<2x1xf32>
    %17 = vector.broadcast %16 : vector<2x1xf32> to vector<2x128xf32>
    %18 = arith.cmpf oeq, %14, %17 : vector<2x128xf32>
    %c128_i32 = arith.constant 128 : i32
    %19 = vector.broadcast %c128_i32 : i32 to vector<2x128xi32>
    %20 = arith.select %18, %10, %19 : vector<2x128xi1>, vector<2x128xi32>
    %cst_12 = arith.constant dense<2147483647> : vector<2xi32>
    %21 = vector.multi_reduction <minsi>, %20, %cst_12 [1] : vector<2x128xi32> to vector<2xi32>
    %22 = vector.shape_cast %21 : vector<2xi32> to vector<2x1xi32>
    %23 = arith.sitofp %22 : vector<2x1xi32> to vector<2x1xf32>
    %24 = vector.extract_strided_slice %9 {offsets = [0, 6], sizes = [2, 1], strides = [1, 1]} : vector<2x128xf32> to vector<2x1xf32>
    %cst_13 = arith.constant 0.000000e+00 : f32
    %25 = vector.broadcast %cst_13 : f32 to vector<2x1xf32>
    %26 = arith.maximumf %24, %25 : vector<2x1xf32>
    %c0_i32 = arith.constant 0 : i32
    %27 = vector.broadcast %c0_i32 : i32 to vector<2x128xi32>
    %28 = arith.cmpi eq, %10, %27 : vector<2x128xi32>
    %c1_i32 = arith.constant 1 : i32
    %29 = vector.broadcast %c1_i32 : i32 to vector<2x128xi32>
    %30 = arith.cmpi eq, %10, %29 : vector<2x128xi32>
    %cst_14 = arith.constant 0.000000e+00 : f32
    %31 = vector.shape_cast %26 : vector<2x1xf32> to vector<2x1xf32>
    %32 = vector.broadcast %31 : vector<2x1xf32> to vector<2x128xf32>
    %33 = vector.broadcast %cst_14 : f32 to vector<2x128xf32>
    %34 = arith.select %30, %32, %33 : vector<2x128xi1>, vector<2x128xf32>
    %35 = vector.shape_cast %23 : vector<2x1xf32> to vector<2x1xf32>
    %36 = vector.broadcast %35 : vector<2x1xf32> to vector<2x128xf32>
    %37 = arith.select %28, %36, %34 : vector<2x128xi1>, vector<2x128xf32>
    %c0_15 = arith.constant 0 : index
    %c0_16 = arith.constant 0 : index
    %38 = vector.load %arg5[%c0_15, %c0_16] : memref<2x128xf32, #tpu.memory_space<vmem>>, vector<2x128xf32>
    tpu.vector_store %arg5[%c0_15, %c0_16], %37 {strides = array<i32>} : memref<2x128xf32, #tpu.memory_space<vmem>>, vector<2x128xf32>,
    return
  }
}

</mosaic_0001>

<bundles_post_ra>
// kernel: actor_forward.1
= control target key start
LH: loop header
LB: loop body
LE: loop exit
PB: predicated region body
PF: predicated region fallthrough
CT: control target
= control target key end

     0   :  { %10 = vsyncpa [#allocation3], 0  ;;  %s461_s0 = inlined_call_operand.vmem [shape: f32[2,25], index: 0, kind: input, shape index: {}]   ;;  %s462_s1 = inlined_call_operand.vmem [shape: f32[2,35], index: 1, kind: input, shape index: {}]   ;;  %s463_s2 = inlined_call_operand.hbm [shape: f32[25,128], index: 2, kind: input, shape index: {}]   ;;  %s464_s3 = inlined_call_operand.vmem [shape: f32[35,128], index: 3, kind: input, shape index: {}]   ;;  %s465_s4 = inlined_call_operand.vmem [shape: f32[1,128], index: 4, kind: input, shape index: {}]   ;;  %s466_s5 = inlined_call_operand.hbm [shape: f32[2,128], index: 5, kind: output, shape index: {}]  }
   0x1   :  { %11 = vsyncpa [#allocation4], 0  ;;  %s374_s18 = smov [#allocation2]   ;;  %s326_s22 = scalar_lea.hbm %s463_s2, 512 }
   0x2   :  { %s21_s19 = sshll.u32 %s374_s18, 4  ;;  %p327_p0 = scmp.ne.s32.totalorder %s463_s2, %s326_s22  ;;  %s22_s19 = int_to_ptr.vmem [resolvable:$true] %s21_s19 }
   0x3   :  { %p330_p1 = scmp.lt.u32.totalorder %s326_s22, %s463_s2 }
   0x5   :  { %p332_p2 = pnand %p330_p1, %p327_p0 }
   0x7   :  { %335 = shalt.err (!%p332_p2)
}
   0x8   :  { %s336_s27 = scalar_lea.vmem %s22_s19, 512  ;;  %p341_p4 = scmp.lt.s32.totalorder %s22_s19, %s22_s19 }
   0x9   :  { %p337_p3 = scmp.ne.s32.totalorder %s22_s19, %s336_s27  ;;  %p342_p5 = scmp.lt.s32.totalorder %s336_s27, %s336_s27 }
   0xb   :  { %p343_p6 = por %p342_p5, %p341_p4 }
   0xd   :  { %p344_p7 = pnand %p343_p6, %p337_p3 }
   0xf   :  { %347 = shalt.err (!%p344_p7)
}
  0x10   :  { %s375_s28 = smov 128   ;;  %s376_s29 = smov 8  }
  0x11   :  { %27 = dma.hbm_to_vmem [thread:$0]  %s463_s2, 512, %s22_s19, [#allocation3], %s375_s28, %s375_s28, %s376_s29  }
  0x12   :  { %370 = dma.done.wait [#allocation3], 512  }
  0x13   :  { %371 = vsyncadd [#allocation3], 4294966784  ;;  %v377_v0 = vmov 0.0|0.0   ;;  %vm378_vm0 = vmmov 0   ;;  %v379_v1 = vmov 0.0   ;;  %v41_v2 = vld [vmem:[%s464_s3] sm:$0xff]  ;;  %v210_v17 = vlaneseq }
  0x14   :  { %302 = vmatprep.subr.bf16.mxu0 %v377_v0  ;;  %308 = vmatprep.subr.bf16.mxu1 %v377_v0  ;;  %v42_v3 = vld [vmem:[%s464_s3 + $0x8] sm:$0xff]  ;;  %v36_v4 = vld [vmem:[#allocation2] sm:$0xff]  ;;  %v43_v7 = vld [vmem:[%s464_s3 + $0x10] sm:$0xff]  ;;  %vm128_vm1 = vcmask 1040384   ;;  %vm380_vm2 = vmmov 1   ;;  %vm50_vm4 = vcmask 1042432  }
  0x15   :  { %299 = vmatprep.mubr.msk.f32.mxu1 %vm378_vm0, %v379_v1  ;;  %288 = vmatprep.mubr.msk.f32.mxu0 %vm378_vm0, %v379_v1  ;;  %v303_v5 = vpack.c.bf16 %v42_v3, %v41_v2  ;;  %v37_v6 = vld [vmem:[#allocation2 + $0x8] sm:$0xff]  ;;  %v44_v8 = vld [vmem:[%s464_s3 + $0x18] sm:$0xff]  ;;  %v38_v10 = vld [vmem:[#allocation2 + $0x10] sm:$0xff]  ;;  %vm124_vm5 = vcmask 203776   ;;  %vm46_vm6 = vcmask 285696   ;;  %v211_v18 = vand.u32 127, %v210_v17 }
  0x16   :  { %v309_v9 = vpack.c.bf16 %v37_v6, %v36_v4  ;;  %v39_v11 = vld [vmem:[#allocation2 + $0x18] sm:$0x1]  ;;  %v306_v12 = vpack.c.bf16 %v44_v8, %v43_v7  ;;  %vm313_vm3 = vmpackc.low %vm128_vm1, %vm380_vm2  ;;  %v45_v14 = vld [vmem:[%s464_s3 + $0x20] sm:$0x7]  ;;  %vm214_vm8 = vcmask 1041408   ;;  %v381_v33 = vmov 6  }
  0x17   :  { %304 = vmatpush3.bf16.msra.mxu0 %v303_v5  ;;  %v312_v13 = vpack.c.bf16 %v39_v11, %v38_v10  ;;  %v35_v15 = vld [vmem:[%s461_s0] sm:$0x3]  ;;  %vm212_vm7 = vcmp.lt.s32.totalorder %v211_v18, 6  ;;  %324 = vset.pattern.permute.xlu1 %v381_v33  ;;  %vm238_vm11 = vcmp.eq.s32.totalorder %v211_v18, 1  ;;  %s382_s0 = smov [#allocation5]   ;;  %vm237_vm12 = vcmp.eq.s32.totalorder %v211_v18, 0 }
  0x18   :  { %310 = vmatpush3.bf16.msra.mxu1 %v309_v9  ;;  %305 = vmatprep.subr.bf16.mxu0 %v377_v0  ;;  %v40_v16 = vld [vmem:[%s462_s1] sm:$0x3]  ;;  %s253_s1 = sshll.u32 %s382_s0, 4  ;;  %s254_s1 = int_to_ptr.vmem [resolvable:$true] %s253_s1 }
  0x19   :  { %311 = vmatprep.subr.bf16.mxu1 %v377_v0  ;;  %v266_v21 = vld [vmem:[%s465_s4] ss:$0 sm:$0xff]  ;;  %325 = vset.pattern.permute.xlu0 %v381_v33  ;;  %s348_s4 = scalar_lea.vmem %s254_s1, 32  ;;  %p353_p9 = scmp.lt.s32.totalorder %s254_s1, %s254_s1 }
  0x1a   :  { %p349_p8 = scmp.ne.s32.totalorder %s254_s1, %s348_s4  ;;  %p354_p10 = scmp.lt.s32.totalorder %s348_s4, %s348_s4 }
  0x1b   :  { %307 = vmatpush3.bf16.msra.mxu0 %v306_v12 }
  0x1c   :  { %314 = vmatpush3.bf16.msk.msra.mxu1 %vm313_vm3, %v312_v13  ;;  %286 = vmatprep.subr.mxu0 %v379_v1  ;;  %p355_p11 = por %p354_p10, %p353_p9 }
  0x1e   :  { %p356_p12 = pnand %p355_p11, %p349_p8 }
  0x1f   :  { %287 = vmatpush3.msk.msra.mxu0 %vm50_vm4, %v45_v14  ;;  %300 = vmatmul.mubr.msk.f32.vlgmr.msra.gmra.mrb[0].mxu1 %vm124_vm5, %v35_v15 }
  0x20   :  { %289 = vmatmul.mubr.msk.f32.vlgmr.msra.gmra.mrb[0].mxu0 %vm46_vm6, %v40_v16 }
  0xf2   :  { %v198_v19 = vpop.f32.mrb[0].mxu1 }
  0xf3   :  { %v120_v20 = vpop.f32.mrb[0].mxu0  ;;  %v301_v22 = vpop.f32.mrb[1].mxu1 }
  0xf4   :  { %v199_v23 = vadd.f32 %v198_v19, %v120_v20  ;;  %v290_v24 = vpop.f32.mrb[1].mxu0 }
  0xf6   :  { %v209_v25 = vadd.f32 %v266_v21, %v199_v23 }
  0xf8   :  { %v213_v26 = vsel %vm212_vm7, %v209_v25, -inf  ;;  %v236_v38 = vmax.f32 %v209_v25, 0.0 }
  0xf9   :  { %v215_v27 = vsel %vm214_vm8, %v213_v26, -inf }
  0xfa   :  { %216 = vmax.xlane.f32.xlu0 %v215_v27 }
 0x187   :  { %v217_v28 = vpop.xlane.xlu0 %216 }
 0x188   :  { %vm218_vm9 = vcmp.eq.f32.partialorder %v213_v26, %v217_v28 }
 0x189   :  { %v219_v29 = vsel %vm218_vm9, %v211_v18, 128 }
 0x18a   :  { %v220_v30 = vsel %vm214_vm8, %v219_v29, 2147483647 }
 0x18b   :  { %v222_v31 = vshra.s32 %v220_v30, 16  ;;  %v221_v34 = vand.u32 65535, %v220_v30 }
 0x18d   :  { %v224_v32 = vcvt.s32.f32 %v222_v31  ;;  %v223_v36 = vcvt.s32.f32 %v221_v34 }
 0x18f   :  { %225 = vmin.xlane.f32.xlu0 %v224_v32 }
 0x21c   :  { %v226_v35 = vpop.xlane.xlu0 %225 }
 0x21d   :  { %vm227_vm10 = vcmp.eq.f32.partialorder %v224_v32, %v226_v35  ;;  %v232_v39 = vcvt.f32.s32 %v226_v35 }
 0x21e   :  { %v228_v37 = vsel %vm227_vm10, %v223_v36, inf }
 0x21f   :  { %229 = vmin.xlane.f32.xlu1 %v228_v37  ;;  %v233_v41 = vshll.u32 %v232_v39, 16 }
 0x230   :  { %241 = vperm.xlu1 %324, %v236_v38  }
 0x2ac   :  { %v230_v40 = vpop.xlane.xlu1 %229 }
 0x2ad   :  { %v231_v42 = vcvt.f32.s32 %v230_v40 }
 0x2af   :  { %v234_v43 = vadd.s32 %v233_v41, %v231_v42 }
 0x2b0   :  { %v242_v44 = vpop.permute.xlu1 %241 }
 0x2b1   :  { %v235_v45 = vcvt.s32.f32 %v234_v43  ;;  %v244_v46 = vsel %vm238_vm11, %v242_v44, 0.0 }
 0x2b3   :  { %v245_v47 = vsel %vm237_vm12, %v235_v45, %v244_v46 }
 0x2b4   :  { %246 = vst [vmem:[#allocation5] sm:$0x3] %v245_v47 }
 0x2b5   :  { %359 = shalt.err (!%p356_p12)
}
 0x2b6   :  { %s360_s23 = scalar_lea.hbm %s466_s5, 32 }
 0x2b7   :  { %p361_p13 = scmp.ne.s32.totalorder %s466_s5, %s360_s23  ;;  %p364_p0 = scmp.lt.u32.totalorder %s360_s23, %s466_s5 }
 0x2b9   :  { %p366_p1 = pnand %p364_p0, %p361_p13 }
 0x2bb   :  { %369 = shalt.err (!%p366_p1)
}
 0x2bc   :  { %256 = dma.vmem_to_hbm [thread:$0]  %s254_s1, 32, %s466_s5, [#allocation4]  }
 0x2bd   :  { %372 = dma.done.wait [#allocation4], 32  }
 0x2be   :  { %373 = vsyncadd [#allocation4], 4294967264 }
 0x2bf   :  { %260 = vsyncpa [#allocation3], 1 }
 0x2c0   :  { %261 = vsyncpa [#allocation4], 1 }

</bundles_post_ra>
